<compile_context>
chip_gen: v6e
topology: v6e:2x2x1
jax: 0.10.0
libtpu: 0.0.40
codegen_flags: <defaults>
</compile_context>

<pallas_src>
import functools
import math

import jax
import jax.numpy as jnp
from jax import lax
from jax.experimental import pallas as pl
from jax.experimental.pallas import tpu as pltpu

_NEG_INF = -1e9  # finite "masked" bias (matches masked_fill(-1e9) semantics)


# ---------------------------------------------------------------------------
# Kernel
# ---------------------------------------------------------------------------
def _flash_kernel(*refs, heads_per_group, head_dim, has_bias):
    """One (batch, head_group, q_tile, kv_tile) flash-attention step.

    q_ref: (1, tq, gw)   k_ref/v_ref: (1, tk, gw)
    bias_ref (optional): (1, 1, tk) key-only or (1, tq, tk) full additive bias
    o_ref: (1, tq, gw)
    scratch: m/l (hpg, tq, 1) f32, acc (hpg, tq, dh) f32
    """
    if has_bias:
        q_ref, k_ref, v_ref, b_ref, o_ref, m_sc, l_sc, acc_sc = refs
    else:
        q_ref, k_ref, v_ref, o_ref, m_sc, l_sc, acc_sc = refs
        b_ref = None

    kv_idx = pl.program_id(3)

    @pl.when(kv_idx == 0)
    def _():
        m_sc[...] = jnp.full_like(m_sc, -jnp.inf)
        l_sc[...] = jnp.zeros_like(l_sc)
        acc_sc[...] = jnp.zeros_like(acc_sc)

    q = q_ref[0]                       # (tq, gw)  pre-scaled, bf16 MXU feed
    k = k_ref[0]                       # (tk, gw)
    v = v_ref[0]                       # (tk, gw)
    bias = b_ref[0].astype(jnp.float32) if has_bias else None  # (1|tq, tk)

    dh = head_dim
    for h in range(heads_per_group):                  # static unroll
        qh = q[:, h * dh:(h + 1) * dh]                # (tq, dh)
        kh = k[:, h * dh:(h + 1) * dh]                # (tk, dh)
        vh = v[:, h * dh:(h + 1) * dh]                # (tk, dh)

        # scores = (Q*scale) K^T — contract last dims (no explicit transpose),
        # bf16 inputs, f32 accumulation on the MXU.
        s = lax.dot_general(qh, kh, (((1,), (1,)), ((), ())),
                            preferred_element_type=jnp.float32)
        if has_bias:
            s = s + bias                              # (1,tk)/(tq,tk) broadcast

        # Online (streaming) softmax update along the key axis.
        m_prev = m_sc[h]                              # (tq, 1)
        m_new = jnp.maximum(m_prev, jnp.max(s, axis=-1, keepdims=True))
        alpha = jnp.exp(m_prev - m_new)
        p = jnp.exp(s - m_new)
        l_sc[h] = alpha * l_sc[h] + jnp.sum(p, axis=-1, keepdims=True)
        acc_sc[h] = alpha * acc_sc[h] + jnp.dot(
            p.astype(vh.dtype), vh, preferred_element_type=jnp.float32)
        m_sc[h] = m_new

    @pl.when(kv_idx == pl.num_programs(3) - 1)
    def _():
        # Direct per-head column-slab stores (no concatenate temporary).
        for h in range(heads_per_group):
            inv_l = pl.reciprocal(l_sc[h], approx=True)       # EUP vrcp
            o_ref[0, :, h * dh:(h + 1) * dh] = (
                acc_sc[h] * inv_l).astype(o_ref.dtype)


# ---------------------------------------------------------------------------
# Wrapper helpers
# ---------------------------------------------------------------------------
def _head_group_width(embed, head_dim):
    """Column width of one head-group (lane-aligned when possible)."""
    if head_dim % 128 == 0:
        return head_dim                       # one head per grid group
    if embed % 128 == 0 and 128 % head_dim == 0:
        return 128                            # several heads per 128-lane slab
    return embed                              # fallback: all heads, one group


def _seq_tiling(n, target):
    """Return (tile, padded_len)."""
    if n <= target:
        return n, n
    padded = ((n + target - 1) // target) * target
    return target, padded


def _pad_axis(x, axis, new_len, value=0.0):
    n = x.shape[axis]
    if n == new_len:
        return x
    widths = [(0, 0)] * x.ndim
    widths[axis] = (0, new_len - n)
    return jnp.pad(x, widths, constant_values=value)


def _vmem_capacity_bytes():
    try:
        info = pltpu.get_tpu_info()
        cap = getattr(info, "vmem_capacity_bytes", None)
        if cap:
            return int(cap)
    except Exception:
        pass
    return 64 * 1024 * 1024  # conservative default (v7x per-core VMEM)


def _mask_to_bias(mask, batch, sq, sk):
    """Mask -> (additive f32 bias, key_only flag). True = attend.

    Accepts (B,1,1,Sk), (B,1,Sq,Sk), (B,Sq,Sk) or (Sq,Sk).  Key-only padding
    masks stay (B,1,Sk) so the kernel never materializes a (B,Sq,Sk) bias.
    """
    if mask is None:
        return None, False
    m = jnp.asarray(mask)
    if m.ndim == 4:
        m = m[:, 0]
    elif m.ndim == 2:
        m = m[None]
    key_only = m.shape[1] == 1
    tgt = (batch, 1 if key_only else sq, sk)
    m = jnp.broadcast_to(m.astype(jnp.bool_), tgt)
    return jnp.where(m, 0.0, _NEG_INF).astype(jnp.float32), key_only


def _flash_attention(q, k, v, bias, key_only, *, num_heads, head_dim,
                     out_dtype):
    """q/k/v: (B, S, E), q pre-scaled, already in the MXU compute dtype.
    bias: None, (B,1,Sk) key-only, or (B,Sq,Sk) full additive f32 bias."""
    b, sq, e = q.shape
    sk = k.shape[1]
    gw = _head_group_width(e, head_dim)
    hpg = gw // head_dim
    groups = e // gw

    in_bytes = q.dtype.itemsize
    out_bytes = jnp.dtype(out_dtype).itemsize
    budget = int(_vmem_capacity_bytes() * 0.75)

    def footprint(tq, tk):
        per = (tq + 2 * tk) * gw * in_bytes + tq * gw * out_bytes
        if bias is not None:
            per += (1 if key_only else tq) * tk * 4
        scratch = hpg * tq * (head_dim + 2) * 4
        return 2 * per + scratch              # double-buffered tiles + scratch

    tq_t, tk_t = 128, 512
    while tk_t > 128 and footprint(min(tq_t, sq), min(tk_t, sk)) > budget:
        tk_t //= 2
    while tq_t > 16 and footprint(min(tq_t, sq), min(tk_t, sk)) > budget:
        tq_t //= 2

    tq, sq_p = _seq_tiling(sq, tq_t)
    tk, sk_p = _seq_tiling(sk, tk_t)

    # Pad sequences to tile multiples; padded keys are masked via the bias.
    q = _pad_axis(q, 1, sq_p)
    k = _pad_axis(k, 1, sk_p)
    v = _pad_axis(v, 1, sk_p)
    if sk_p != sk:
        if bias is None:
            bias = jnp.zeros((b, 1, sk), jnp.float32)
            key_only = True
        bias = _pad_axis(bias, 2, sk_p, value=_NEG_INF)
    if bias is not None and not key_only:
        bias = _pad_axis(bias, 1, sq_p, value=0.0)

    has_bias = bias is not None
    kernel = functools.partial(_flash_kernel, heads_per_group=hpg,
                               head_dim=head_dim, has_bias=has_bias)

    in_specs = [
        pl.BlockSpec((1, tq, gw), lambda bi, gi, qi, ki: (bi, qi, gi)),
        pl.BlockSpec((1, tk, gw), lambda bi, gi, qi, ki: (bi, ki, gi)),
        pl.BlockSpec((1, tk, gw), lambda bi, gi, qi, ki: (bi, ki, gi)),
    ]
    args = [q, k, v]
    if has_bias:
        if key_only:
            in_specs.append(
                pl.BlockSpec((1, 1, tk), lambda bi, gi, qi, ki: (bi, 0, ki)))
        else:
            in_specs.append(
                pl.BlockSpec((1, tq, tk), lambda bi, gi, qi, ki: (bi, qi, ki)))
        args.append(bias)

    out = pl.pallas_call(
        kernel,
        out_shape=jax.ShapeDtypeStruct((b, sq_p, e), out_dtype),
        grid_spec=pltpu.PrefetchScalarGridSpec(
            num_scalar_prefetch=0,
            grid=(b, groups, sq_p // tq, sk_p // tk),
            in_specs=in_specs,
            out_specs=pl.BlockSpec((1, tq, gw),
                                   lambda bi, gi, qi, ki: (bi, qi, gi)),
            scratch_shapes=[
                pltpu.VMEM((hpg, tq, 1), jnp.float32),          # m (running max)
                pltpu.VMEM((hpg, tq, 1), jnp.float32),          # l (running sum)
                pltpu.VMEM((hpg, tq, head_dim), jnp.float32),   # acc
            ]),
        compiler_params=pltpu.CompilerParams(
            dimension_semantics=("parallel", "parallel", "parallel",
                                 "arbitrary"),
            vmem_limit_bytes=budget),
    )(*args)

    return out[:, :sq, :] if sq_p != sq else out


# ---------------------------------------------------------------------------
# Module
# ---------------------------------------------------------------------------
class ScaledDotProductAttentionPallas:
    """JAX/Pallas port of the PyTorch ScaledDotProductAttention module."""

    def __init__(self, embed_size: int, num_heads: int, dropout: float = 0.1,
                 local_attention_window=None, use_low_rank_approx: bool = False,
                 key=jax.random.PRNGKey(42)):
        assert embed_size % num_heads == 0
        self.embed_size = embed_size
        self.num_heads = num_heads
        self.head_dim = embed_size // num_heads
        # TODO(synk): local_attention_window / use_low_rank_approx keep their
        # module defaults (None / False) and are not implemented (global attn).

        ks = jax.random.split(key, 8)
        lim = 1.0 / (embed_size ** 0.5)

        def init_w(k):
            return jax.random.uniform(k, (embed_size, embed_size),
                                      jnp.float32, -lim, lim)

        def init_b(k):
            return jax.random.uniform(k, (embed_size,), jnp.float32, -lim, lim)

        self.w_q, self.b_q = init_w(ks[0]), init_b(ks[1])
        self.w_k, self.b_k = init_w(ks[2]), init_b(ks[3])
        self.w_v, self.b_v = init_w(ks[4]), init_b(ks[5])
        self.w_o, self.b_o = init_w(ks[6]), init_b(ks[7])

    def __call__(self, query, key, value, mask=None):
        b, sq, _ = query.shape
        sk = key.shape[1]

        # Input projections (glue: plain JAX matmuls, stay in (B, S, E)).
        q = query @ self.w_q.T + self.b_q
        k = key @ self.w_k.T + self.b_k
        v = value @ self.w_v.T + self.b_v

        # Softmax scale hoisted out of the kernel (fused into the projection).
        q = q * (1.0 / math.sqrt(self.head_dim))

        # Feed the MXU bf16 (f32 accumulation happens inside the kernel).
        compute_dtype = jnp.bfloat16 if q.dtype == jnp.float32 else q.dtype
        bias, key_only = _mask_to_bias(mask, b, sq, sk)

        ctx = _flash_attention(q.astype(compute_dtype),
                               k.astype(compute_dtype),
                               v.astype(compute_dtype),
                               bias, key_only,
                               num_heads=self.num_heads,
                               head_dim=self.head_dim,
                               out_dtype=query.dtype)

        # TODO(synk): dropout on attention weights is identity in eval mode.
        out = ctx @ self.w_o.T + self.b_o

        # The PyTorch module returns (attention_output, attention_output).
        return out, out


# ---------------------------------------------------------------------------
# Pure-JAX reference for correctness checks
# ---------------------------------------------------------------------------
def _reference(module, query, key, value, mask=None):
    b, sq, e = query.shape
    sk = key.shape[1]
    h, dh = module.num_heads, module.head_dim
    q = (query @ module.w_q.T + module.b_q).reshape(b, sq, h, dh).transpose(0, 2, 1, 3)
    k = (key @ module.w_k.T + module.b_k).reshape(b, sk, h, dh).transpose(0, 2, 1, 3)
    v = (value @ module.w_v.T + module.b_v).reshape(b, sk, h, dh).transpose(0, 2, 1, 3)
    s = jnp.einsum("bhqd,bhkd->bhqk", q, k) / math.sqrt(dh)
    bias, key_only = _mask_to_bias(mask, b, sq, sk)
    if bias is not None:
        full = jnp.broadcast_to(bias, (b, sq, sk)) if key_only else bias
        s = s + full[:, None, :, :]
    p = jax.nn.softmax(s, axis=-1)
    ctx = jnp.einsum("bhqk,bhkd->bhqd", p, v).transpose(0, 2, 1, 3).reshape(b, sq, e)
    return ctx @ module.w_o.T + module.b_o


if __name__ == "__main__":
    batch, seq, embed, heads = 2, 8, 32, 4

    rng = jax.random.PRNGKey(0)
    kq, kk, kv, km = jax.random.split(rng, 4)
    query = jax.random.normal(kq, (batch, seq, embed), jnp.float32)
    key = jax.random.normal(kk, (batch, seq, embed), jnp.float32)
    value = jax.random.normal(kv, (batch, seq, embed), jnp.float32)

    module = ScaledDotProductAttentionPallas(embed_size=embed, num_heads=heads)

    # 1) Unmasked path (no bias operand reaches the kernel at all).
    out, attn = module(query, key, value, mask=None)
    out = jax.block_until_ready(out)
    ref = _reference(module, query, key, value, mask=None)
    assert out.shape == (batch, seq, embed)
    assert jnp.allclose(out, ref, atol=2e-2, rtol=2e-2)

    # 2) Padding mask (B, 1, 1, Sk) -> key-only (B, 1, Sk) bias in the kernel.
    pad_mask = (jax.random.uniform(km, (batch, 1, 1, seq)) > 0.3)
    pad_mask = pad_mask.at[:, :, :, 0].set(True)   # keep at least one key
    out_m, _ = module(query, key, value, mask=pad_mask)
    out_m = jax.block_until_ready(out_m)
    ref_m = _reference(module, query, key, value, mask=pad_mask)
    assert jnp.allclose(out_m, ref_m, atol=2e-2, rtol=2e-2)

    # 3) Causal-style mask (B, 1, Sq, Sk) -> full (B, Sq, Sk) bias path.
    causal = jnp.tril(jnp.ones((seq, seq), jnp.bool_))[None, None]
    out_c, _ = module(query, key, value, mask=causal)
    out_c = jax.block_until_ready(out_c)
    ref_c = _reference(module, query, key, value, mask=causal)
    assert jnp.allclose(out_c, ref_c, atol=2e-2, rtol=2e-2)

    # 4) Non-tile-multiple sequence length exercises the cdiv/padding path.
    seq2 = 200
    k2q, k2k, k2v = jax.random.split(jax.random.PRNGKey(1), 3)
    q2 = jax.random.normal(k2q, (1, seq2, embed), jnp.float32)
    kk2 = jax.random.normal(k2k, (1, seq2, embed), jnp.float32)
    vv2 = jax.random.normal(k2v, (1, seq2, embed), jnp.float32)
    out2, _ = module(q2, kk2, vv2, mask=None)
    out2 = jax.block_until_ready(out2)
    ref2 = _reference(module, q2, kk2, vv2, mask=None)
    assert out2.shape == (1, seq2, embed)
    assert jnp.allclose(out2, ref2, atol=2e-2, rtol=2e-2)

    print("KERNEL_OK")
</pallas_src>

<mosaic_0001>
module attributes {stable_mosaic.version = 11 : i64} {
  func.func @_flash_kernel(%arg0: i32, %arg1: i32, %arg2: i32, %arg3: i32, %arg4: memref<1x8x32xbf16, #tpu.memory_space<vmem>>, %arg5: memref<1x8x32xbf16, #tpu.memory_space<vmem>>, %arg6: memref<1x8x32xbf16, #tpu.memory_space<vmem>>, %arg7: memref<1x8x32xf32, #tpu.memory_space<vmem>>, %arg8: memref<4x8x1xf32, #tpu.memory_space<vmem>>, %arg9: memref<4x8x1xf32, #tpu.memory_space<vmem>>, %arg10: memref<4x8x8xf32, #tpu.memory_space<vmem>>) attributes {dimension_semantics = [#tpu.dimension_semantics<parallel>, #tpu.dimension_semantics<parallel>, #tpu.dimension_semantics<parallel>, #tpu.dimension_semantics<arbitrary>], iteration_bounds = array<i64: 2, 1, 1, 1>, scalar_prefetch = 0 : i64, scratch_operands = 3 : i64, tpu.core_type = #tpu.core_type<tc>, window_params = [{transform_indices = @transform_0, window_bounds = array<i64: 1, 8, 32>}, {transform_indices = @transform_1, window_bounds = array<i64: 1, 8, 32>}, {transform_indices = @transform_2, window_bounds = array<i64: 1, 8, 32>}, {transform_indices = @transform_3, window_bounds = array<i64: 1, 8, 32>}]} {
    %c0_i32 = arith.constant 0 : i32
    %0 = arith.cmpi eq, %arg3, %c0_i32 : i32
    %1 = arith.extui %0 : i1 to i32
    %c0_i32_0 = arith.constant 0 : i32
    %2 = arith.cmpi ne, %1, %c0_i32_0 : i32
    scf.if %2 {
      %cst_95 = arith.constant 0xFF800000 : f32
      %156 = vector.broadcast %cst_95 : f32 to vector<4x8x1xf32>
      %c0_96 = arith.constant 0 : index
      %c0_97 = arith.constant 0 : index
      %c0_98 = arith.constant 0 : index
      %157 = vector.load %arg8[%c0_96, %c0_97, %c0_98] : memref<4x8x1xf32, #tpu.memory_space<vmem>>, vector<4x8x1xf32>
      tpu.vector_store %arg8[%c0_96, %c0_97, %c0_98], %156 {strides = array<i32>} : memref<4x8x1xf32, #tpu.memory_space<vmem>>, vector<4x8x1xf32>,
      %cst_99 = arith.constant 0.000000e+00 : f32
      %158 = vector.broadcast %cst_99 : f32 to vector<4x8x1xf32>
      %c0_100 = arith.constant 0 : index
      %c0_101 = arith.constant 0 : index
      %c0_102 = arith.constant 0 : index
      %159 = vector.load %arg9[%c0_100, %c0_101, %c0_102] : memref<4x8x1xf32, #tpu.memory_space<vmem>>, vector<4x8x1xf32>
      tpu.vector_store %arg9[%c0_100, %c0_101, %c0_102], %158 {strides = array<i32>} : memref<4x8x1xf32, #tpu.memory_space<vmem>>, vector<4x8x1xf32>,
      %cst_103 = arith.constant 0.000000e+00 : f32
      %160 = vector.broadcast %cst_103 : f32 to vector<4x8x8xf32>
      %c0_104 = arith.constant 0 : index
      %c0_105 = arith.constant 0 : index
      %c0_106 = arith.constant 0 : index
      %161 = vector.load %arg10[%c0_104, %c0_105, %c0_106] : memref<4x8x8xf32, #tpu.memory_space<vmem>>, vector<4x8x8xf32>
      tpu.vector_store %arg10[%c0_104, %c0_105, %c0_106], %160 {strides = array<i32>} : memref<4x8x8xf32, #tpu.memory_space<vmem>>, vector<4x8x8xf32>,
    } else {
    }
    %c0 = arith.constant 0 : index
    %c0_1 = arith.constant 0 : index
    %c0_2 = arith.constant 0 : index
    %3 = vector.load %arg4[%c0, %c0_1, %c0_2] : memref<1x8x32xbf16, #tpu.memory_space<vmem>>, vector<1x8x32xbf16>
    %4 = vector.shape_cast %3 : vector<1x8x32xbf16> to vector<8x32xbf16>
    %c0_3 = arith.constant 0 : index
    %c0_4 = arith.constant 0 : index
    %c0_5 = arith.constant 0 : index
    %5 = vector.load %arg5[%c0_3, %c0_4, %c0_5] : memref<1x8x32xbf16, #tpu.memory_space<vmem>>, vector<1x8x32xbf16>
    %6 = vector.shape_cast %5 : vector<1x8x32xbf16> to vector<8x32xbf16>
    %c0_6 = arith.constant 0 : index
    %c0_7 = arith.constant 0 : index
    %c0_8 = arith.constant 0 : index
    %7 = vector.load %arg6[%c0_6, %c0_7, %c0_8] : memref<1x8x32xbf16, #tpu.memory_space<vmem>>, vector<1x8x32xbf16>
    %8 = vector.shape_cast %7 : vector<1x8x32xbf16> to vector<8x32xbf16>
    %9 = vector.extract_strided_slice %4 {offsets = [0, 0], sizes = [8, 8], strides = [1, 1]} : vector<8x32xbf16> to vector<8x8xbf16>
    %10 = vector.extract_strided_slice %6 {offsets = [0, 0], sizes = [8, 8], strides = [1, 1]} : vector<8x32xbf16> to vector<8x8xbf16>
    %11 = vector.extract_strided_slice %8 {offsets = [0, 0], sizes = [8, 8], strides = [1, 1]} : vector<8x32xbf16> to vector<8x8xbf16>
    %cst = arith.constant dense<0.000000e+00> : vector<8x8xf32>
    %12 = tpu.matmul %9, %10, %cst {dimension_numbers = #tpu.dot_dimension_numbers<[1], [1], [0], [0], [0, 0, 1, 0], [], []>} : vector<8x8xbf16>, vector<8x8xbf16>, vector<8x8xf32> -> vector<8x8xf32>
    %c0_9 = arith.constant 0 : index
    %c0_10 = arith.constant 0 : index
    %c0_11 = arith.constant 0 : index
    %13 = vector.load %arg8[%c0_9, %c0_10, %c0_11] : memref<4x8x1xf32, #tpu.memory_space<vmem>>, vector<1x8x1xf32>
    %14 = vector.shape_cast %13 : vector<1x8x1xf32> to vector<8x1xf32>
    %cst_12 = arith.constant dense<0xFF800000> : vector<8xf32>
    %15 = vector.multi_reduction <maximumf>, %12, %cst_12 [1] : vector<8x8xf32> to vector<8xf32>
    %16 = vector.shape_cast %15 : vector<8xf32> to vector<8x1xf32>
    %17 = arith.maximumf %14, %16 : vector<8x1xf32>
    %18 = arith.subf %14, %17 : vector<8x1xf32>
    %19 = math.exp %18 : vector<8x1xf32>
    %20 = vector.broadcast %17 : vector<8x1xf32> to vector<8x8xf32>
    %21 = arith.subf %12, %20 : vector<8x8xf32>
    %22 = math.exp %21 : vector<8x8xf32>
    %c0_13 = arith.constant 0 : index
    %c0_14 = arith.constant 0 : index
    %c0_15 = arith.constant 0 : index
    %23 = vector.load %arg9[%c0_13, %c0_14, %c0_15] : memref<4x8x1xf32, #tpu.memory_space<vmem>>, vector<1x8x1xf32>
    %24 = vector.shape_cast %23 : vector<1x8x1xf32> to vector<8x1xf32>
    %25 = arith.mulf %19, %24 : vector<8x1xf32>
    %cst_16 = arith.constant dense<0.000000e+00> : vector<8xf32>
    %26 = vector.multi_reduction <add>, %22, %cst_16 [1] : vector<8x8xf32> to vector<8xf32>
    %27 = vector.shape_cast %26 : vector<8xf32> to vector<8x1xf32>
    %28 = arith.addf %25, %27 : vector<8x1xf32>
    %c0_17 = arith.constant 0 : index
    %c0_18 = arith.constant 0 : index
    %c0_19 = arith.constant 0 : index
    %29 = vector.load %arg9[%c0_17, %c0_18, %c0_19] : memref<4x8x1xf32, #tpu.memory_space<vmem>>, vector<1x8x1xf32>
    %30 = vector.shape_cast %29 : vector<1x8x1xf32> to vector<8x1xf32>
    %31 = vector.shape_cast %28 : vector<8x1xf32> to vector<1x8x1xf32>
    tpu.vector_store %arg9[%c0_17, %c0_18, %c0_19], %31 {strides = array<i32>} : memref<4x8x1xf32, #tpu.memory_space<vmem>>, vector<1x8x1xf32>,
    %c0_20 = arith.constant 0 : index
    %c0_21 = arith.constant 0 : index
    %c0_22 = arith.constant 0 : index
    %32 = vector.load %arg10[%c0_20, %c0_21, %c0_22] : memref<4x8x8xf32, #tpu.memory_space<vmem>>, vector<1x8x8xf32>
    %33 = vector.shape_cast %32 : vector<1x8x8xf32> to vector<8x8xf32>
    %34 = vector.broadcast %19 : vector<8x1xf32> to vector<8x8xf32>
    %35 = arith.mulf %34, %33 : vector<8x8xf32>
    %36 = arith.truncf %22 : vector<8x8xf32> to vector<8x8xbf16>
    %cst_23 = arith.constant dense<0.000000e+00> : vector<8x8xf32>
    %37 = tpu.matmul %36, %11, %cst_23 {dimension_numbers = #tpu.dot_dimension_numbers<[1], [0], [0], [1], [0, 0, 1, 1], [], []>} : vector<8x8xbf16>, vector<8x8xbf16>, vector<8x8xf32> -> vector<8x8xf32>
    %38 = arith.addf %35, %37 : vector<8x8xf32>
    %c0_24 = arith.constant 0 : index
    %c0_25 = arith.constant 0 : index
    %c0_26 = arith.constant 0 : index
    %39 = vector.load %arg10[%c0_24, %c0_25, %c0_26] : memref<4x8x8xf32, #tpu.memory_space<vmem>>, vector<1x8x8xf32>
    %40 = vector.shape_cast %39 : vector<1x8x8xf32> to vector<8x8xf32>
    %41 = vector.shape_cast %38 : vector<8x8xf32> to vector<1x8x8xf32>
    tpu.vector_store %arg10[%c0_24, %c0_25, %c0_26], %41 {strides = array<i32>} : memref<4x8x8xf32, #tpu.memory_space<vmem>>, vector<1x8x8xf32>,
    %c0_27 = arith.constant 0 : index
    %c0_28 = arith.constant 0 : index
    %c0_29 = arith.constant 0 : index
    %42 = vector.load %arg8[%c0_27, %c0_28, %c0_29] : memref<4x8x1xf32, #tpu.memory_space<vmem>>, vector<1x8x1xf32>
    %43 = vector.shape_cast %42 : vector<1x8x1xf32> to vector<8x1xf32>
    %44 = vector.shape_cast %17 : vector<8x1xf32> to vector<1x8x1xf32>
    tpu.vector_store %arg8[%c0_27, %c0_28, %c0_29], %44 {strides = array<i32>} : memref<4x8x1xf32, #tpu.memory_space<vmem>>, vector<1x8x1xf32>,
    %45 = vector.extract_strided_slice %4 {offsets = [0, 8], sizes = [8, 8], strides = [1, 1]} : vector<8x32xbf16> to vector<8x8xbf16>
    %46 = vector.extract_strided_slice %6 {offsets = [0, 8], sizes = [8, 8], strides = [1, 1]} : vector<8x32xbf16> to vector<8x8xbf16>
    %47 = vector.extract_strided_slice %8 {offsets = [0, 8], sizes = [8, 8], strides = [1, 1]} : vector<8x32xbf16> to vector<8x8xbf16>
    %cst_30 = arith.constant dense<0.000000e+00> : vector<8x8xf32>
    %48 = tpu.matmul %45, %46, %cst_30 {dimension_numbers = #tpu.dot_dimension_numbers<[1], [1], [0], [0], [0, 0, 1, 0], [], []>} : vector<8x8xbf16>, vector<8x8xbf16>, vector<8x8xf32> -> vector<8x8xf32>
    %c1 = arith.constant 1 : index
    %c0_31 = arith.constant 0 : index
    %c0_32 = arith.constant 0 : index
    %49 = vector.load %arg8[%c1, %c0_31, %c0_32] : memref<4x8x1xf32, #tpu.memory_space<vmem>>, vector<1x8x1xf32>
    %50 = vector.shape_cast %49 : vector<1x8x1xf32> to vector<8x1xf32>
    %cst_33 = arith.constant dense<0xFF800000> : vector<8xf32>
    %51 = vector.multi_reduction <maximumf>, %48, %cst_33 [1] : vector<8x8xf32> to vector<8xf32>
    %52 = vector.shape_cast %51 : vector<8xf32> to vector<8x1xf32>
    %53 = arith.maximumf %50, %52 : vector<8x1xf32>
    %54 = arith.subf %50, %53 : vector<8x1xf32>
    %55 = math.exp %54 : vector<8x1xf32>
    %56 = vector.broadcast %53 : vector<8x1xf32> to vector<8x8xf32>
    %57 = arith.subf %48, %56 : vector<8x8xf32>
    %58 = math.exp %57 : vector<8x8xf32>
    %c1_34 = arith.constant 1 : index
    %c0_35 = arith.constant 0 : index
    %c0_36 = arith.constant 0 : index
    %59 = vector.load %arg9[%c1_34, %c0_35, %c0_36] : memref<4x8x1xf32, #tpu.memory_space<vmem>>, vector<1x8x1xf32>
    %60 = vector.shape_cast %59 : vector<1x8x1xf32> to vector<8x1xf32>
    %61 = arith.mulf %55, %60 : vector<8x1xf32>
    %cst_37 = arith.constant dense<0.000000e+00> : vector<8xf32>
    %62 = vector.multi_reduction <add>, %58, %cst_37 [1] : vector<8x8xf32> to vector<8xf32>
    %63 = vector.shape_cast %62 : vector<8xf32> to vector<8x1xf32>
    %64 = arith.addf %61, %63 : vector<8x1xf32>
    %c1_38 = arith.constant 1 : index
    %c0_39 = arith.constant 0 : index
    %c0_40 = arith.constant 0 : index
    %65 = vector.load %arg9[%c1_38, %c0_39, %c0_40] : memref<4x8x1xf32, #tpu.memory_space<vmem>>, vector<1x8x1xf32>
    %66 = vector.shape_cast %65 : vector<1x8x1xf32> to vector<8x1xf32>
    %67 = vector.shape_cast %64 : vector<8x1xf32> to vector<1x8x1xf32>
    tpu.vector_store %arg9[%c1_38, %c0_39, %c0_40], %67 {strides = array<i32>} : memref<4x8x1xf32, #tpu.memory_space<vmem>>, vector<1x8x1xf32>,
    %c1_41 = arith.constant 1 : index
    %c0_42 = arith.constant 0 : index
    %c0_43 = arith.constant 0 : index
    %68 = vector.load %arg10[%c1_41, %c0_42, %c0_43] : memref<4x8x8xf32, #tpu.memory_space<vmem>>, vector<1x8x8xf32>
    %69 = vector.shape_cast %68 : vector<1x8x8xf32> to vector<8x8xf32>
    %70 = vector.broadcast %55 : vector<8x1xf32> to vector<8x8xf32>
    %71 = arith.mulf %70, %69 : vector<8x8xf32>
    %72 = arith.truncf %58 : vector<8x8xf32> to vector<8x8xbf16>
    %cst_44 = arith.constant dense<0.000000e+00> : vector<8x8xf32>
    %73 = tpu.matmul %72, %47, %cst_44 {dimension_numbers = #tpu.dot_dimension_numbers<[1], [0], [0], [1], [0, 0, 1, 1], [], []>} : vector<8x8xbf16>, vector<8x8xbf16>, vector<8x8xf32> -> vector<8x8xf32>
    %74 = arith.addf %71, %73 : vector<8x8xf32>
    %c1_45 = arith.constant 1 : index
    %c0_46 = arith.constant 0 : index
    %c0_47 = arith.constant 0 : index
    %75 = vector.load %arg10[%c1_45, %c0_46, %c0_47] : memref<4x8x8xf32, #tpu.memory_space<vmem>>, vector<1x8x8xf32>
    %76 = vector.shape_cast %75 : vector<1x8x8xf32> to vector<8x8xf32>
    %77 = vector.shape_cast %74 : vector<8x8xf32> to vector<1x8x8xf32>
    tpu.vector_store %arg10[%c1_45, %c0_46, %c0_47], %77 {strides = array<i32>} : memref<4x8x8xf32, #tpu.memory_space<vmem>>, vector<1x8x8xf32>,
    %c1_48 = arith.constant 1 : index
    %c0_49 = arith.constant 0 : index
    %c0_50 = arith.constant 0 : index
    %78 = vector.load %arg8[%c1_48, %c0_49, %c0_50] : memref<4x8x1xf32, #tpu.memory_space<vmem>>, vector<1x8x1xf32>
    %79 = vector.shape_cast %78 : vector<1x8x1xf32> to vector<8x1xf32>
    %80 = vector.shape_cast %53 : vector<8x1xf32> to vector<1x8x1xf32>
    tpu.vector_store %arg8[%c1_48, %c0_49, %c0_50], %80 {strides = array<i32>} : memref<4x8x1xf32, #tpu.memory_space<vmem>>, vector<1x8x1xf32>,
    %81 = vector.extract_strided_slice %4 {offsets = [0, 16], sizes = [8, 8], strides = [1, 1]} : vector<8x32xbf16> to vector<8x8xbf16>
    %82 = vector.extract_strided_slice %6 {offsets = [0, 16], sizes = [8, 8], strides = [1, 1]} : vector<8x32xbf16> to vector<8x8xbf16>
    %83 = vector.extract_strided_slice %8 {offsets = [0, 16], sizes = [8, 8], strides = [1, 1]} : vector<8x32xbf16> to vector<8x8xbf16>
    %cst_51 = arith.constant dense<0.000000e+00> : vector<8x8xf32>
    %84 = tpu.matmul %81, %82, %cst_51 {dimension_numbers = #tpu.dot_dimension_numbers<[1], [1], [0], [0], [0, 0, 1, 0], [], []>} : vector<8x8xbf16>, vector<8x8xbf16>, vector<8x8xf32> -> vector<8x8xf32>
    %c2 = arith.constant 2 : index
    %c0_52 = arith.constant 0 : index
    %c0_53 = arith.constant 0 : index
    %85 = vector.load %arg8[%c2, %c0_52, %c0_53] : memref<4x8x1xf32, #tpu.memory_space<vmem>>, vector<1x8x1xf32>
    %86 = vector.shape_cast %85 : vector<1x8x1xf32> to vector<8x1xf32>
    %cst_54 = arith.constant dense<0xFF800000> : vector<8xf32>
    %87 = vector.multi_reduction <maximumf>, %84, %cst_54 [1] : vector<8x8xf32> to vector<8xf32>
    %88 = vector.shape_cast %87 : vector<8xf32> to vector<8x1xf32>
    %89 = arith.maximumf %86, %88 : vector<8x1xf32>
    %90 = arith.subf %86, %89 : vector<8x1xf32>
    %91 = math.exp %90 : vector<8x1xf32>
    %92 = vector.broadcast %89 : vector<8x1xf32> to vector<8x8xf32>
    %93 = arith.subf %84, %92 : vector<8x8xf32>
    %94 = math.exp %93 : vector<8x8xf32>
    %c2_55 = arith.constant 2 : index
    %c0_56 = arith.constant 0 : index
    %c0_57 = arith.constant 0 : index
    %95 = vector.load %arg9[%c2_55, %c0_56, %c0_57] : memref<4x8x1xf32, #tpu.memory_space<vmem>>, vector<1x8x1xf32>
    %96 = vector.shape_cast %95 : vector<1x8x1xf32> to vector<8x1xf32>
    %97 = arith.mulf %91, %96 : vector<8x1xf32>
    %cst_58 = arith.constant dense<0.000000e+00> : vector<8xf32>
    %98 = vector.multi_reduction <add>, %94, %cst_58 [1] : vector<8x8xf32> to vector<8xf32>
    %99 = vector.shape_cast %98 : vector<8xf32> to vector<8x1xf32>
    %100 = arith.addf %97, %99 : vector<8x1xf32>
    %c2_59 = arith.constant 2 : index
    %c0_60 = arith.constant 0 : index
    %c0_61 = arith.constant 0 : index
    %101 = vector.load %arg9[%c2_59, %c0_60, %c0_61] : memref<4x8x1xf32, #tpu.memory_space<vmem>>, vector<1x8x1xf32>
    %102 = vector.shape_cast %101 : vector<1x8x1xf32> to vector<8x1xf32>
    %103 = vector.shape_cast %100 : vector<8x1xf32> to vector<1x8x1xf32>
    tpu.vector_store %arg9[%c2_59, %c0_60, %c0_61], %103 {strides = array<i32>} : memref<4x8x1xf32, #tpu.memory_space<vmem>>, vector<1x8x1xf32>,
    %c2_62 = arith.constant 2 : index
    %c0_63 = arith.constant 0 : index
    %c0_64 = arith.constant 0 : index
    %104 = vector.load %arg10[%c2_62, %c0_63, %c0_64] : memref<4x8x8xf32, #tpu.memory_space<vmem>>, vector<1x8x8xf32>
    %105 = vector.shape_cast %104 : vector<1x8x8xf32> to vector<8x8xf32>
    %106 = vector.broadcast %91 : vector<8x1xf32> to vector<8x8xf32>
    %107 = arith.mulf %106, %105 : vector<8x8xf32>
    %108 = arith.truncf %94 : vector<8x8xf32> to vector<8x8xbf16>
    %cst_65 = arith.constant dense<0.000000e+00> : vector<8x8xf32>
    %109 = tpu.matmul %108, %83, %cst_65 {dimension_numbers = #tpu.dot_dimension_numbers<[1], [0], [0], [1], [0, 0, 1, 1], [], []>} : vector<8x8xbf16>, vector<8x8xbf16>, vector<8x8xf32> -> vector<8x8xf32>
    %110 = arith.addf %107, %109 : vector<8x8xf32>
    %c2_66 = arith.constant 2 : index
    %c0_67 = arith.constant 0 : index
    %c0_68 = arith.constant 0 : index
    %111 = vector.load %arg10[%c2_66, %c0_67, %c0_68] : memref<4x8x8xf32, #tpu.memory_space<vmem>>, vector<1x8x8xf32>
    %112 = vector.shape_cast %111 : vector<1x8x8xf32> to vector<8x8xf32>
    %113 = vector.shape_cast %110 : vector<8x8xf32> to vector<1x8x8xf32>
    tpu.vector_store %arg10[%c2_66, %c0_67, %c0_68], %113 {strides = array<i32>} : memref<4x8x8xf32, #tpu.memory_space<vmem>>, vector<1x8x8xf32>,
    %c2_69 = arith.constant 2 : index
    %c0_70 = arith.constant 0 : index
    %c0_71 = arith.constant 0 : index
    %114 = vector.load %arg8[%c2_69, %c0_70, %c0_71] : memref<4x8x1xf32, #tpu.memory_space<vmem>>, vector<1x8x1xf32>
    %115 = vector.shape_cast %114 : vector<1x8x1xf32> to vector<8x1xf32>
    %116 = vector.shape_cast %89 : vector<8x1xf32> to vector<1x8x1xf32>
    tpu.vector_store %arg8[%c2_69, %c0_70, %c0_71], %116 {strides = array<i32>} : memref<4x8x1xf32, #tpu.memory_space<vmem>>, vector<1x8x1xf32>,
    %117 = vector.extract_strided_slice %4 {offsets = [0, 24], sizes = [8, 8], strides = [1, 1]} : vector<8x32xbf16> to vector<8x8xbf16>
    %118 = vector.extract_strided_slice %6 {offsets = [0, 24], sizes = [8, 8], strides = [1, 1]} : vector<8x32xbf16> to vector<8x8xbf16>
    %119 = vector.extract_strided_slice %8 {offsets = [0, 24], sizes = [8, 8], strides = [1, 1]} : vector<8x32xbf16> to vector<8x8xbf16>
    %cst_72 = arith.constant dense<0.000000e+00> : vector<8x8xf32>
    %120 = tpu.matmul %117, %118, %cst_72 {dimension_numbers = #tpu.dot_dimension_numbers<[1], [1], [0], [0], [0, 0, 1, 0], [], []>} : vector<8x8xbf16>, vector<8x8xbf16>, vector<8x8xf32> -> vector<8x8xf32>
    %c3 = arith.constant 3 : index
    %c0_73 = arith.constant 0 : index
    %c0_74 = arith.constant 0 : index
    %121 = vector.load %arg8[%c3, %c0_73, %c0_74] : memref<4x8x1xf32, #tpu.memory_space<vmem>>, vector<1x8x1xf32>
    %122 = vector.shape_cast %121 : vector<1x8x1xf32> to vector<8x1xf32>
    %cst_75 = arith.constant dense<0xFF800000> : vector<8xf32>
    %123 = vector.multi_reduction <maximumf>, %120, %cst_75 [1] : vector<8x8xf32> to vector<8xf32>
    %124 = vector.shape_cast %123 : vector<8xf32> to vector<8x1xf32>
    %125 = arith.maximumf %122, %124 : vector<8x1xf32>
    %126 = arith.subf %122, %125 : vector<8x1xf32>
    %127 = math.exp %126 : vector<8x1xf32>
    %128 = vector.broadcast %125 : vector<8x1xf32> to vector<8x8xf32>
    %129 = arith.subf %120, %128 : vector<8x8xf32>
    %130 = math.exp %129 : vector<8x8xf32>
    %c3_76 = arith.constant 3 : index
    %c0_77 = arith.constant 0 : index
    %c0_78 = arith.constant 0 : index
    %131 = vector.load %arg9[%c3_76, %c0_77, %c0_78] : memref<4x8x1xf32, #tpu.memory_space<vmem>>, vector<1x8x1xf32>
    %132 = vector.shape_cast %131 : vector<1x8x1xf32> to vector<8x1xf32>
    %133 = arith.mulf %127, %132 : vector<8x1xf32>
    %cst_79 = arith.constant dense<0.000000e+00> : vector<8xf32>
    %134 = vector.multi_reduction <add>, %130, %cst_79 [1] : vector<8x8xf32> to vector<8xf32>
    %135 = vector.shape_cast %134 : vector<8xf32> to vector<8x1xf32>
    %136 = arith.addf %133, %135 : vector<8x1xf32>
    %c3_80 = arith.constant 3 : index
    %c0_81 = arith.constant 0 : index
    %c0_82 = arith.constant 0 : index
    %137 = vector.load %arg9[%c3_80, %c0_81, %c0_82] : memref<4x8x1xf32, #tpu.memory_space<vmem>>, vector<1x8x1xf32>
    %138 = vector.shape_cast %137 : vector<1x8x1xf32> to vector<8x1xf32>
    %139 = vector.shape_cast %136 : vector<8x1xf32> to vector<1x8x1xf32>
    tpu.vector_store %arg9[%c3_80, %c0_81, %c0_82], %139 {strides = array<i32>} : memref<4x8x1xf32, #tpu.memory_space<vmem>>, vector<1x8x1xf32>,
    %c3_83 = arith.constant 3 : index
    %c0_84 = arith.constant 0 : index
    %c0_85 = arith.constant 0 : index
    %140 = vector.load %arg10[%c3_83, %c0_84, %c0_85] : memref<4x8x8xf32, #tpu.memory_space<vmem>>, vector<1x8x8xf32>
    %141 = vector.shape_cast %140 : vector<1x8x8xf32> to vector<8x8xf32>
    %142 = vector.broadcast %127 : vector<8x1xf32> to vector<8x8xf32>
    %143 = arith.mulf %142, %141 : vector<8x8xf32>
    %144 = arith.truncf %130 : vector<8x8xf32> to vector<8x8xbf16>
    %cst_86 = arith.constant dense<0.000000e+00> : vector<8x8xf32>
    %145 = tpu.matmul %144, %119, %cst_86 {dimension_numbers = #tpu.dot_dimension_numbers<[1], [0], [0], [1], [0, 0, 1, 1], [], []>} : vector<8x8xbf16>, vector<8x8xbf16>, vector<8x8xf32> -> vector<8x8xf32>
    %146 = arith.addf %143, %145 : vector<8x8xf32>
    %c3_87 = arith.constant 3 : index
    %c0_88 = arith.constant 0 : index
    %c0_89 = arith.constant 0 : index
    %147 = vector.load %arg10[%c3_87, %c0_88, %c0_89] : memref<4x8x8xf32, #tpu.memory_space<vmem>>, vector<1x8x8xf32>
    %148 = vector.shape_cast %147 : vector<1x8x8xf32> to vector<8x8xf32>
    %149 = vector.shape_cast %146 : vector<8x8xf32> to vector<1x8x8xf32>
    tpu.vector_store %arg10[%c3_87, %c0_88, %c0_89], %149 {strides = array<i32>} : memref<4x8x8xf32, #tpu.memory_space<vmem>>, vector<1x8x8xf32>,
    %c3_90 = arith.constant 3 : index
    %c0_91 = arith.constant 0 : index
    %c0_92 = arith.constant 0 : index
    %150 = vector.load %arg8[%c3_90, %c0_91, %c0_92] : memref<4x8x1xf32, #tpu.memory_space<vmem>>, vector<1x8x1xf32>
    %151 = vector.shape_cast %150 : vector<1x8x1xf32> to vector<8x1xf32>
    %152 = vector.shape_cast %125 : vector<8x1xf32> to vector<1x8x1xf32>
    tpu.vector_store %arg8[%c3_90, %c0_91, %c0_92], %152 {strides = array<i32>} : memref<4x8x1xf32, #tpu.memory_space<vmem>>, vector<1x8x1xf32>,
    %c0_i32_93 = arith.constant 0 : i32
    %153 = arith.cmpi eq, %arg3, %c0_i32_93 : i32
    %154 = arith.extui %153 : i1 to i32
    %c0_i32_94 = arith.constant 0 : i32
    %155 = arith.cmpi ne, %154, %c0_i32_94 : i32
    scf.if %155 {
      %c0_95 = arith.constant 0 : index
      %c0_96 = arith.constant 0 : index
      %c0_97 = arith.constant 0 : index
      %156 = vector.load %arg9[%c0_95, %c0_96, %c0_97] : memref<4x8x1xf32, #tpu.memory_space<vmem>>, vector<1x8x1xf32>
      %157 = vector.shape_cast %156 : vector<1x8x1xf32> to vector<8x1xf32>
      %158 = tpu.reciprocal %157 {approx = true} : vector<8x1xf32> -> vector<8x1xf32>
      %c0_98 = arith.constant 0 : index
      %c0_99 = arith.constant 0 : index
      %c0_100 = arith.constant 0 : index
      %159 = vector.load %arg10[%c0_98, %c0_99, %c0_100] : memref<4x8x8xf32, #tpu.memory_space<vmem>>, vector<1x8x8xf32>
      %160 = vector.shape_cast %159 : vector<1x8x8xf32> to vector<8x8xf32>
      %161 = vector.broadcast %158 : vector<8x1xf32> to vector<8x8xf32>
      %162 = arith.mulf %160, %161 : vector<8x8xf32>
      %c0_101 = arith.constant 0 : index
      %c0_102 = arith.constant 0 : index
      %c0_103 = arith.constant 0 : index
      %163 = vector.load %arg7[%c0_101, %c0_102, %c0_103] : memref<1x8x32xf32, #tpu.memory_space<vmem>>, vector<1x8x8xf32>
      %164 = vector.shape_cast %163 : vector<1x8x8xf32> to vector<8x8xf32>
      %165 = vector.shape_cast %162 : vector<8x8xf32> to vector<1x8x8xf32>
      tpu.vector_store %arg7[%c0_101, %c0_102, %c0_103], %165 {strides = array<i32>} : memref<1x8x32xf32, #tpu.memory_space<vmem>>, vector<1x8x8xf32>,
      %c1_104 = arith.constant 1 : index
      %c0_105 = arith.constant 0 : index
      %c0_106 = arith.constant 0 : index
      %166 = vector.load %arg9[%c1_104, %c0_105, %c0_106] : memref<4x8x1xf32, #tpu.memory_space<vmem>>, vector<1x8x1xf32>
      %167 = vector.shape_cast %166 : vector<1x8x1xf32> to vector<8x1xf32>
      %168 = tpu.reciprocal %167 {approx = true} : vector<8x1xf32> -> vector<8x1xf32>
      %c1_107 = arith.constant 1 : index
      %c0_108 = arith.constant 0 : index
      %c0_109 = arith.constant 0 : index
      %169 = vector.load %arg10[%c1_107, %c0_108, %c0_109] : memref<4x8x8xf32, #tpu.memory_space<vmem>>, vector<1x8x8xf32>
      %170 = vector.shape_cast %169 : vector<1x8x8xf32> to vector<8x8xf32>
      %171 = vector.broadcast %168 : vector<8x1xf32> to vector<8x8xf32>
      %172 = arith.mulf %170, %171 : vector<8x8xf32>
      %c0_110 = arith.constant 0 : index
      %c0_111 = arith.constant 0 : index
      %c8 = arith.constant 8 : index
      %173 = vector.load %arg7[%c0_110, %c0_111, %c8] : memref<1x8x32xf32, #tpu.memory_space<vmem>>, vector<1x8x8xf32>
      %174 = vector.shape_cast %173 : vector<1x8x8xf32> to vector<8x8xf32>
      %175 = vector.shape_cast %172 : vector<8x8xf32> to vector<1x8x8xf32>
      tpu.vector_store %arg7[%c0_110, %c0_111, %c8], %175 {strides = array<i32>} : memref<1x8x32xf32, #tpu.memory_space<vmem>>, vector<1x8x8xf32>,
      %c2_112 = arith.constant 2 : index
      %c0_113 = arith.constant 0 : index
      %c0_114 = arith.constant 0 : index
      %176 = vector.load %arg9[%c2_112, %c0_113, %c0_114] : memref<4x8x1xf32, #tpu.memory_space<vmem>>, vector<1x8x1xf32>
      %177 = vector.shape_cast %176 : vector<1x8x1xf32> to vector<8x1xf32>
      %178 = tpu.reciprocal %177 {approx = true} : vector<8x1xf32> -> vector<8x1xf32>
      %c2_115 = arith.constant 2 : index
      %c0_116 = arith.constant 0 : index
      %c0_117 = arith.constant 0 : index
      %179 = vector.load %arg10[%c2_115, %c0_116, %c0_117] : memref<4x8x8xf32, #tpu.memory_space<vmem>>, vector<1x8x8xf32>
      %180 = vector.shape_cast %179 : vector<1x8x8xf32> to vector<8x8xf32>
      %181 = vector.broadcast %178 : vector<8x1xf32> to vector<8x8xf32>
      %182 = arith.mulf %180, %181 : vector<8x8xf32>
      %c0_118 = arith.constant 0 : index
      %c0_119 = arith.constant 0 : index
      %c16 = arith.constant 16 : index
      %183 = vector.load %arg7[%c0_118, %c0_119, %c16] : memref<1x8x32xf32, #tpu.memory_space<vmem>>, vector<1x8x8xf32>
      %184 = vector.shape_cast %183 : vector<1x8x8xf32> to vector<8x8xf32>
      %185 = vector.shape_cast %182 : vector<8x8xf32> to vector<1x8x8xf32>
      tpu.vector_store %arg7[%c0_118, %c0_119, %c16], %185 {strides = array<i32>} : memref<1x8x32xf32, #tpu.memory_space<vmem>>, vector<1x8x8xf32>,
      %c3_120 = arith.constant 3 : index
      %c0_121 = arith.constant 0 : index
      %c0_122 = arith.constant 0 : index
      %186 = vector.load %arg9[%c3_120, %c0_121, %c0_122] : memref<4x8x1xf32, #tpu.memory_space<vmem>>, vector<1x8x1xf32>
      %187 = vector.shape_cast %186 : vector<1x8x1xf32> to vector<8x1xf32>
      %188 = tpu.reciprocal %187 {approx = true} : vector<8x1xf32> -> vector<8x1xf32>
      %c3_123 = arith.constant 3 : index
      %c0_124 = arith.constant 0 : index
      %c0_125 = arith.constant 0 : index
      %189 = vector.load %arg10[%c3_123, %c0_124, %c0_125] : memref<4x8x8xf32, #tpu.memory_space<vmem>>, vector<1x8x8xf32>
      %190 = vector.shape_cast %189 : vector<1x8x8xf32> to vector<8x8xf32>
      %191 = vector.broadcast %188 : vector<8x1xf32> to vector<8x8xf32>
      %192 = arith.mulf %190, %191 : vector<8x8xf32>
      %c0_126 = arith.constant 0 : index
      %c0_127 = arith.constant 0 : index
      %c24 = arith.constant 24 : index
      %193 = vector.load %arg7[%c0_126, %c0_127, %c24] : memref<1x8x32xf32, #tpu.memory_space<vmem>>, vector<1x8x8xf32>
      %194 = vector.shape_cast %193 : vector<1x8x8xf32> to vector<8x8xf32>
      %195 = vector.shape_cast %192 : vector<8x8xf32> to vector<1x8x8xf32>
      tpu.vector_store %arg7[%c0_126, %c0_127, %c24], %195 {strides = array<i32>} : memref<1x8x32xf32, #tpu.memory_space<vmem>>, vector<1x8x8xf32>,
    } else {
    }
    return
  }
  func.func @transform_0(%arg0: i32, %arg1: i32, %arg2: i32, %arg3: i32) -> (i32, i32, i32) {
    %c0_i32 = arith.constant 0 : i32
    return %arg0, %arg2, %arg1 : i32, i32, i32
  }
  func.func @transform_1(%arg0: i32, %arg1: i32, %arg2: i32, %arg3: i32) -> (i32, i32, i32) {
    %c0_i32 = arith.constant 0 : i32
    return %arg0, %arg3, %arg1 : i32, i32, i32
  }
  func.func @transform_2(%arg0: i32, %arg1: i32, %arg2: i32, %arg3: i32) -> (i32, i32, i32) {
    %c0_i32 = arith.constant 0 : i32
    return %arg0, %arg3, %arg1 : i32, i32, i32
  }
  func.func @transform_3(%arg0: i32, %arg1: i32, %arg2: i32, %arg3: i32) -> (i32, i32, i32) {
    %c0_i32 = arith.constant 0 : i32
    return %arg0, %arg2, %arg1 : i32, i32, i32
  }
}

</mosaic_0001>

<bundles_post_ra>
// kernel: tpu_custom_call.1
= control target key start
LH: loop header
LB: loop body
LE: loop exit
PB: predicated region body
PF: predicated region fallthrough
CT: control target
= control target key end

     0   :  { %s1822_s0 = inlined_call_operand.hbm [shape: bf16[2,8,32], index: 0, kind: input, shape index: {}]   ;;  %s1823_s1 = inlined_call_operand.hbm [shape: bf16[2,8,32], index: 1, kind: input, shape index: {}]   ;;  %s1824_s2 = inlined_call_operand.hbm [shape: bf16[2,8,32], index: 2, kind: input, shape index: {}]   ;;  %s1825_s3 = inlined_call_operand.hbm [shape: f32[2,8,32], index: 3, kind: output, shape index: {}]  }
   0x1   :  { %1829 = sst [smem:[#allocation17_spill]] %s1823_s1 }
   0x2   :  { %8 = vsyncpa [#allocation6], 0 }
   0x3   :  { %10 = vsyncpa [#allocation6 + $0x1], 0 }
   0x4   :  { %11 = vsyncpa [#allocation9], 0 }
   0x5   :  { %13 = vsyncpa [#allocation9 + $0x1], 0 }
   0x6   :  { %14 = vsyncpa [#allocation7], 0 }
   0x7   :  { %16 = vsyncpa [#allocation7 + $0x1], 0  ;;  %s1487_s12 = smov 0   ;;  %s1489_s13 = smov 0  }
   0x8   :  { %s1491_s14 = smov 0   ;;  %s1493_s15 = smov 0  }
   0x9   :  { %s1495_s16 = smov 0   ;;  %s1497_s17 = smov 0  }
   0xa LB: > { %1830 = sst [smem:[#allocation15_spill]] %s1447_s16  ;;  %s1518_s18 = sadd.s32 4294967295, %s1451_s17   ;;  %s1451_s17 = sphi %s1497_s17, %s22_s17   ;;  %s1447_s16 = sphi %s1495_s16, %s1842_s16   ;;  %s1443_s15 = sphi %s1493_s15, %s1841_s15   ;;  %s1439_s14 = sphi %s1491_s14, %s1845_s14   ;;  %s1435_s13 = sphi %s1489_s13, %s1844_s13   ;;  %s1431_s12 = sphi %s1487_s12, %s1843_s12  }
   0xb   : > { %s1080_s19 = sadd.s32 4294967294, %s1451_s17   ;;  %s48_s20 = sadd.s32 1, %s1447_s16 }
   0xc   : > { %s59_s21 = sadd.s32 1, %s1439_s14  ;;  %p50_p0 = scmp.ge.s32.totalorder %s48_s20, 2 }
   0xd   : > { %p66_p1 = scmp.ne.s32.totalorder %s1439_s14, %s1435_s13  ;;  %p67_p2 = scmp.eq.s32.totalorder %s1451_s17, 0 }
   0xe   : > { %p72_p3 = scmp.ne.s32.totalorder %s1435_s13, %s1431_s12  ;;  %s1847_s20 = smov (%p50_p0, %s48_s20), 0 }
   0xf   : > { %1831 = sst [smem:[#allocation16_spill]] %s1847_s20  ;;  %p1530_p4 = por %p67_p2, %p66_p1 }
  0x10   : > { %p73_p5 = scmp.eq.s32.totalorder %s1518_s18, 0  ;;  %s52_s23 = ssub.s32 %s1447_s16, %s1847_s20 }
  0x11   : > { %p160_p6 = scmp.eq.s32.totalorder %s1518_s18, 1  ;;  %p57_p7 = scmp.eq.s32.totalorder %s52_s23, 0 }
  0x12   : > { %p1538_p8 = por %p73_p5, %p72_p3  ;;  %p166_p10 = scmp.eq.s32.totalorder %s1080_s19, 1 }
  0x13   : > { %p1542_p9 = por %p160_p6, %p66_p1  ;;  %p1195_p13 = scmp.lt.s32.totalorder %s1451_s17, 2 }
  0x14   : > { %s1547_s26 = scalar_select %p57_p7, %s1439_s14, %s59_s21  }
  0x15   : > { %p1549_p11 = por %p166_p10, %p72_p3  ;;  %s1826_s28 = sand.u32 1, %s1439_s14  }
  0x16   : > { %s1558_s29 = sshll.u32 %s1826_s28, 2  ;;  %s1561_s30 = sshll.u32 %s1447_s16, 6 }
  0x17   : > { %p1565_p0 = pnand %p1195_p13, %p1530_p4  ;;  %s206_s5 = sand.u32 1, %s1451_s17  }
  0x18   : > { %s1837_s1 = sld [smem:[#allocation17_spill]]  ;;  %s210_s9 = scalar_lea.vmem [#allocation8], %s1558_s29 }
  0x19   : > { %s219_s10 = sshll.u32 %s210_s9, 4  ;;  %p1089_p1 = scmp.ge.s32.totalorder %s1451_s17, 1  ;;  %s220_s10 = int_to_ptr.vmem [resolvable:$true] %s219_s10 }
  0x1a   : > { %p244_p2 = scmp.lt.s32.totalorder %s1451_s17, 3  ;;  %s1577_s11 = scalar_lea.sflag [#allocation9], %s206_s5 }
  0x1b   : > { %p1285_p3 = pneg %p1565_p0  ;;  %s1296_s19 = scalar_lea.vmem %s220_s10, 64 }
  0x1c   : > { %p1297_p4 = scmp.ne.s32.totalorder %s220_s10, %s1296_s19  ;;  %s1453_s21 = smov [#allocation8]  }
  0x1d   : > { %s1301_s22 = sshll.u32 %s1453_s21, 4  ;;  %s1302_s22 = int_to_ptr.vmem [resolvable:$false] %s1301_s22 }
  0x1e   : > { %s217_s8 = scalar_lea.hbm %s1837_s1, %s1561_s30  ;;  %p1299_p5 = pnand %p1297_p4, %p1285_p3 }
  0x1f   : > { %s1303_s23 = scalar_lea.vmem %s1302_s22, 128  ;;  %p1304_p7 = scmp.lt.s32.totalorder %s220_s10, %s1302_s22 }
  0x20   : > { %p1300_p6 = pneg %p1299_p5  ;;  %p1305_p10 = scmp.lt.s32.totalorder %s1303_s23, %s1296_s19 }
  0x22   : > { %p1306_p13 = por %p1305_p10, %p1304_p7 }
  0x24   : > { %p1307_p12 = pnand %p1306_p13, %p1300_p6 }
  0x26   : > { %1310 = shalt.err (!%p1307_p12)
}
  0x27   : > { %1187 = dma.hbm_to_vmem [thread:$0]  (!%p1565_p0), %s217_s8, 64, %s220_s10, %s1577_s11  }
  0x28   : > { %p1591_p4 = pnand %p1089_p1, %p244_p2  ;;  %s197_s9 = scalar_lea.hbm %s1822_s0, %s1561_s30 }
  0x29   : > { %s190_s19 = scalar_lea.vmem [#allocation5], %s1558_s29  ;;  %s237_s28 = scalar_lea.hbm %s1824_s2, %s1561_s30 }
  0x2a   : > { %s199_s21 = sshll.u32 %s190_s19, 4  ;;  %s1839_s1 = sand.u32 1, %s1439_s14   ;;  %s200_s21 = int_to_ptr.vmem [resolvable:$true] %s199_s21 }
  0x2b   : > { %s187_s20 = scalar_lea.sflag [#allocation6], %s1839_s1  ;;  %s1324_s8 = scalar_lea.vmem %s200_s21, 64 }
  0x2c   : > { %p1325_p12 = scmp.ne.s32.totalorder %s200_s21, %s1324_s8  ;;  %s1454_s10 = smov [#allocation5]  }
  0x2d   : > { %s1329_s16 = sshll.u32 %s1454_s10, 4  ;;  %s1330_s16 = int_to_ptr.vmem [resolvable:$false] %s1329_s16 }
  0x2e   : > { %p1327_p1 = pnand %p1325_p12, %p1285_p3  ;;  %s1331_s6 = scalar_lea.vmem %s1330_s16, 128 }
  0x2f   : > { %p1332_p5 = scmp.lt.s32.totalorder %s200_s21, %s1330_s16  ;;  %p1333_p6 = scmp.lt.s32.totalorder %s1331_s6, %s1324_s8 }
  0x30   : > { %p1328_p2 = pneg %p1327_p1 }
  0x31   : > { %p1334_p7 = por %p1333_p6, %p1332_p5 }
  0x33   : > { %p1335_p10 = pnand %p1334_p7, %p1328_p2 }
  0x35   : > { %1338 = shalt.err (!%p1335_p10)
}
  0x36   : > { %1184 = dma.hbm_to_vmem [thread:$0]  (!%p1565_p0), %s197_s9, 64, %s200_s21, %s187_s20  }
  0x37   : > { %s230_s1 = scalar_lea.vmem [#allocation10], %s1558_s29  ;;  %s1455_s22 = smov [#allocation10]  }
  0x38   : > { %s239_s7 = sshll.u32 %s230_s1, 4  ;;  %s1357_s16 = sshll.u32 %s1455_s22, 4  ;;  %s240_s7 = int_to_ptr.vmem [resolvable:$true] %s239_s7  ;;  %s1358_s16 = int_to_ptr.vmem [resolvable:$false] %s1357_s16 }
  0x39   : > { %s1352_s19 = scalar_lea.vmem %s240_s7, 64  ;;  %s1359_s23 = scalar_lea.vmem %s1358_s16, 128 }
  0x3a   : > { %p1353_p13 = scmp.ne.s32.totalorder %s240_s7, %s1352_s19  ;;  %p1360_p2 = scmp.lt.s32.totalorder %s240_s7, %s1358_s16 }
  0x3b   : > { %p1361_p5 = scmp.lt.s32.totalorder %s1359_s23, %s1352_s19 }
  0x3c   : > { %p1355_p12 = pnand %p1353_p13, %p1285_p3 }
  0x3d   : > { %p1362_p6 = por %p1361_p5, %p1360_p2 }
  0x3e   : > { %p1356_p1 = pneg %p1355_p12 }
  0x40   : > { %p1363_p7 = pnand %p1362_p6, %p1356_p1 }
  0x42   : > { %1366 = shalt.err (!%p1363_p7)
}
  0x43   : > { %1190 = dma.hbm_to_vmem [thread:$0]  (!%p1565_p0), %s237_s28, 64, %s240_s7, %s1577_s11  }
  0x44   : > { %248 = sbr.rel (%p1591_p4) target bundleno = 1482 (0x5ca), region = 32  ;;  %s1626_s9 = sand.u32 (!%p1591_p4), 1, %s1435_s13  }
  0x45   : > { %s1629_s21 = sshll.u32 (!%p1591_p4), %s1626_s9, 2  ;;  %s251_s4 = scalar_lea.sflag (!%p1591_p4), [#allocation6], %s1626_s9 }
  0x46   : > { %s254_s8 = scalar_lea.vmem (!%p1591_p4), [#allocation5], %s1629_s21 }
  0x49   : > { %1418 = dma.done.wait (%p1538_p8), %s251_s4, 64  }
  0x4a   : > { %1420 = vsyncadd (%p1538_p8), %s251_s4, 4294967232  ;;  %s259_s28 = sand.u32 1, %s1518_s18   ;;  %s263_s11 = scalar_lea.vmem [#allocation8], %s1629_s21 }
  0x4b   : > { %s260_s30 = scalar_lea.sflag [#allocation9], %s259_s28 }
  0x4c   : > { %1422 = dma.done.wait (%p1538_p8), %s260_s30, 128  }
  0x4d   : > { %1424 = vsyncadd (%p1538_p8), %s260_s30, 4294967168  ;;  %vm319_vm0 = vcmask 64512   ;;  %v1456_v0 = vmov 0.0   ;;  %vm1457_vm1 = vmmov 0   ;;  %v325_v1 = vld [vmem:[%s263_s11] sm:$0xf] }
  0x4e   : > { %1125 = vmatprep.subr.bf16.mxu0 %v1456_v0  ;;  %320 = vst.msk [vmem:[#allocation4] sm:$0xff] %vm319_vm0, %v1456_v0  ;;  %321 = vst.msk [vmem:[#allocation4 + $0x8] sm:$0xff] %vm319_vm0, %v1456_v0  ;;  %1127 = vmatprep.mubr.msk.bf16.mxu0 %vm1457_vm1, %v1456_v0  ;;  %v332_v2 = vsel %vm319_vm0, %v325_v1, 0  ;;  %v324_v3 = vld [vmem:[%s254_s8] sm:$0xf]  ;;  %vm310_vm2 = vcmask 7168   ;;  %v1097_v11 = vcombine.low %v325_v1, %v325_v1 }
  0x4f   : > { %322 = vst.msk [vmem:[#allocation4 + $0x10] sm:$0xff] %vm319_vm0, %v1456_v0  ;;  %323 = vst.msk [vmem:[#allocation4 + $0x18] sm:$0xff] %vm319_vm0, %v1456_v0  ;;  %1131 = vmatprep.subr.bf16.mxu1 %v1456_v0  ;;  %1133 = vmatprep.mubr.msk.bf16.mxu1 %vm1457_vm1, %v1456_v0  ;;  %v1458_v4 = vmov -inf   ;;  %v1459_v10 = vmov 0   ;;  %s1460_s18 = smov 120   ;;  %v1096_v12 = vcombine.low %v324_v3, %v324_v3  ;;  %s1461_s24 = smov 112  }
  0x50   : > { %1126 = vmatpush3.bf16.xpose.msra.mxu0 %v332_v2  ;;  %311 = vst.msk [vmem:[#allocation2] sm:$0xff] %vm310_vm2, %v1458_v4  ;;  %312 = vst.msk [vmem:[#allocation2 + $0x8] sm:$0xff] %vm310_vm2, %v1458_v4  ;;  %1255 = vset.pattern.permute.xlu0 %v1459_v10  ;;  %s1462_s5 = smov 104   ;;  %vm409_vm3 = vcmask 1043456   ;;  %s272_s10 = scalar_lea.vmem [#allocation10], %s1629_s21  ;;  %vm896_vm4 = vcmask 130112  }
  0x51   : > { %1143 = vmatprep.subr.bf16.mxu0 %v1456_v0  ;;  %313 = vst.msk [vmem:[#allocation2 + $0x10] sm:$0xff] %vm310_vm2, %v1458_v4  ;;  %314 = vst.msk [vmem:[#allocation2 + $0x18] sm:$0xff] %vm310_vm2, %v1458_v4  ;;  %1256 = vset.pattern.permute.xlu1 %v1459_v10  ;;  %v1692_v17 = vld [vmem:[%s272_s10] sm:$0xf]  ;;  %s1093_s6 = sshll.u32 %s1626_s9, 3  ;;  %s1463_s7 = smov 8  }
  0x52   : > { %315 = vst.msk [vmem:[#allocation3] sm:$0xff] %vm310_vm2, %v1456_v0  ;;  %316 = vst.msk [vmem:[#allocation3 + $0x8] sm:$0xff] %vm310_vm2, %v1456_v0  ;;  %464 = vrot.lane.b32.xlu1 %v1097_v11, %s1460_s18  ;;  %v411_v18 = vsel %vm409_vm3, %v1692_v17, 0  ;;  %v1099_v63 = vcombine.low %v1692_v17, %v1692_v17  ;;  %s1767_s1 = scalar_lea.vmem [#allocation11], %s1093_s6  ;;  %s1464_s19 = smov 16   ;;  %vm911_vm5 = vcmask 195712  }
  0x53   : > { %317 = vst.msk [vmem:[#allocation3 + $0x10] sm:$0xff] %vm310_vm2, %v1456_v0  ;;  %318 = vst.msk [vmem:[#allocation3 + $0x18] sm:$0xff] %vm310_vm2, %v1456_v0  ;;  %1132 = vmatpush3.bf16.msra.mxu1 %v411_v18  ;;  %s1465_s22 = smov 24   ;;  %s1106_s16 = sshll.u32 %s1443_s15, 7  ;;  %vm926_vm6 = vcmask 261312  }
  0x54   : > { %1137 = vmatprep.subr.bf16.mxu1 %v1456_v0  ;;  %s944_s23 = sshll.u32 %s1767_s1, 4  ;;  %s1779_s21 = scalar_lea.hbm %s1825_s3, %s1106_s16  ;;  %s945_s23 = int_to_ptr.vmem [resolvable:$true] %s944_s23 }
  0x55   : > { %s929_s4 = scalar_lea.sflag [#allocation7], %s1626_s9  ;;  %s1367_s8 = scalar_lea.vmem %s945_s23, 128 }
  0x56   : > { %459 = vrot.lane.b32.xlu1 %v1096_v12, %s1460_s18  ;;  %p1368_p8 = scmp.ne.s32.totalorder %s945_s23, %s1367_s8  ;;  %s1466_s28 = smov [#allocation11]  }
  0x57   : > { %1128 = vmatmul.mubr.msk.bf16.vlgmr.msra.gmra.mxu0 %vm319_vm0, %v324_v3  ;;  %v1681_v13 = vld [vmem:[#allocation2] sm:$0xff]  ;;  %v513_v52 = vld [vmem:[#allocation2 + $0x8] sm:$0xff]  ;;  %s1371_s30 = sshll.u32 %s1466_s28, 4  ;;  %s1372_s30 = int_to_ptr.vmem [resolvable:$false] %s1371_s30 }
  0x58   : > { %1145 = vmatprep.mubr.msk.bf16.mxu0 %vm1457_vm1, %v1456_v0  ;;  %v1722_v56 = vld [vmem:[#allocation2 + $0x10] sm:$0xff]  ;;  %v786_v60 = vld [vmem:[#allocation2 + $0x18] sm:$0xff]  ;;  %p1369_p0 = pnand %p1368_p8, %p1542_p9  ;;  %s1373_s15 = scalar_lea.vmem %s1372_s30, 256 }
  0x59   : > { %p1374_p4 = scmp.lt.s32.totalorder %s945_s23, %s1372_s30  ;;  %p1375_p10 = scmp.lt.s32.totalorder %s1373_s15, %s1367_s8 }
  0x5a   : > { %602 = vrot.lane.b32.xlu1 %v1097_v11, %s1461_s24  ;;  %p1370_p3 = pneg %p1369_p0 }
  0x5b   : > { %p1376_p13 = por %p1375_p10, %p1374_p4 }
  0x5d   : > { %p1377_p12 = pnand %p1376_p13, %p1370_p3 }
  0x5e   : > { %600 = vrot.lane.b32.xlu1 %v1096_v12, %s1461_s24 }
  0x62   : > { %737 = vrot.lane.b32.xlu1 %v1097_v11, %s1462_s5 }
  0x66   : > { %735 = vrot.lane.b32.xlu1 %v1096_v12, %s1462_s5 }
  0xc4   : > { %v465_v22 = vpop.permute.xlu1 %464 }
  0xc5   : > { %v470_v25 = vsel %vm319_vm0, %v465_v22, 0 }
  0xc8   : > { %v460_v23 = vpop.permute.xlu1 %459 }
  0xcc   : > { %v603_v27 = vpop.permute.xlu1 %602 }
  0xcd   : > { %v608_v29 = vsel %vm319_vm0, %v603_v27, 0 }
  0xd0   : > { %v601_v28 = vpop.permute.xlu1 %600 }
  0xd4   : > { %v738_v30 = vpop.permute.xlu1 %737 }
  0xd5   : > { %v743_v31 = vsel %vm319_vm0, %v738_v30, 0 }
  0xd8   : > { %v736_v32 = vpop.permute.xlu1 %735 }
 0x117   : > { %v368_v5 = vpop.f32.mrf.mxu0 }
 0x118   : > { %v375_v6 = vsel %vm319_vm0, %v368_v5, -inf }
 0x119   : > { %376 = vmax.xlane.f32.xlu0 %v375_v6  ;;  %v1129_v7 = vpop.f32.mrf.mxu0 }
 0x11b   : > { %v371_v8 = vpop.f32.mrf.mxu0 }
 0x11d   : > { %v1130_v9 = vpop.f32.mrf.mxu0 }
 0x1a2   : > { %v377_v14 = vpop.xlane.xlu0 %376 }
 0x1a3   : > { %v1684_v15 = vmax.f32 %v1681_v13, %v377_v14 }
 0x1a5   : > { %v379_v16 = vsub.f32 %v1681_v13, %v1684_v15  ;;  %455 = vst.msk [vmem:[#allocation2] sm:$0xff] %vm310_vm2, %v1684_v15  ;;  %384 = vperm.xlu0 %1255, %v1684_v15  }
 0x220   : > { %v385_v19 = vpop.permute.xlu0 %384 }
 0x221   : > { %v387_v20 = vsub.f32 %v368_v5, %v385_v19 }
 0x223   : > { %v388_v21 = vmul.f32 1.442695, %v387_v20 }
 0x225   : > { %1259 = vpow2.f32 %v388_v21 }
 0x232   : > { %v1697_v24 = vpop.eup %1259 }
 0x233   : > { %v405_v26 = vpack.c.bf16 %v1697_v24, %v1697_v24  ;;  %v392_v2 = vsel %vm319_vm0, %v1697_v24, 0.0 }
 0x235   : > { %1134 = vmatmul.mubr.msk.bf16.vlgmr.msra.gmra.mxu1 %vm319_vm0, %v405_v26 }
 0x236   : > { %1138 = vmatpush3.bf16.xpose.msra.mxu1 %v470_v25  ;;  %1139 = vmatprep.mubr.msk.bf16.mxu1 %vm1457_vm1, %v1456_v0 }
 0x237   : > { %1149 = vmatprep.subr.bf16.mxu1 %v1456_v0 }
 0x23d   : > { %1140 = vmatmul.mubr.msk.bf16.vlgmr.msra.gmra.mxu1 %vm319_vm0, %v460_v23 }
 0x23e   : > { %1150 = vmatpush3.bf16.xpose.msra.mxu1 %v608_v29  ;;  %1151 = vmatprep.mubr.msk.bf16.mxu1 %vm1457_vm1, %v1456_v0 }
 0x23f   : > { %1161 = vmatprep.subr.bf16.mxu1 %v1456_v0 }
 0x245   : > { %1152 = vmatmul.mubr.msk.bf16.vlgmr.msra.gmra.mxu1 %vm319_vm0, %v601_v28 }
 0x246   : > { %1162 = vmatpush3.bf16.xpose.msra.mxu1 %v743_v31  ;;  %1163 = vmatprep.mubr.msk.bf16.mxu1 %vm1457_vm1, %v1456_v0 }
 0x24d   : > { %1164 = vmatmul.mubr.msk.bf16.vlgmr.msra.gmra.mxu1 %vm319_vm0, %v736_v32  ;;  %v380_v32 = vmul.f32 1.442695, %v379_v16  ;;  %v530_v16 = vld [vmem:[#allocation3 + $0x8] sm:$0xff] }
 0x2f5   : > { %v1716_v33 = vpop.f32.mrf.mxu1 }
 0x2f7   : > { %v1135_v34 = vpop.f32.mrf.mxu1 }
 0x2f9   : > { %v450_v35 = vpop.f32.mrf.mxu1 }
 0x2fb   : > { %v1136_v36 = vpop.f32.mrf.mxu1 }
 0x2fd   : > { %v506_v37 = vpop.f32.mrf.mxu1 }
 0x2fe   : > { %v514_v38 = vsel %vm319_vm0, %v506_v37, -inf }
 0x2ff   : > { %515 = vmax.xlane.f32.xlu1 %v514_v38  ;;  %v1141_v39 = vpop.f32.mrf.mxu1  ;;  %v390_v38 = vld [vmem:[#allocation3] sm:$0xff] }
 0x301   : > { %v509_v40 = vpop.f32.mrf.mxu1 }
 0x303   : > { %v1142_v41 = vpop.f32.mrf.mxu1 }
 0x305   : > { %v644_v42 = vpop.f32.mrf.mxu1 }
 0x306   : > { %v652_v43 = vsel %vm319_vm0, %v644_v42, -inf }
 0x307   : > { %653 = vmax.xlane.f32.xlu0 %v652_v43  ;;  %v1153_v44 = vpop.f32.mrf.mxu1 }
 0x309   : > { %v647_v45 = vpop.f32.mrf.mxu1 }
 0x30a   : > { %v668_v45 = vld [vmem:[#allocation3 + $0x10] sm:$0xff] }
 0x30b   : > { %v1154_v46 = vpop.f32.mrf.mxu1 }
 0x30d   : > { %v779_v47 = vpop.f32.mrf.mxu1 }
 0x30e   : > { %v787_v48 = vsel %vm319_vm0, %v779_v47, -inf }
 0x30f   : > { %788 = vmax.xlane.f32.xlu1 %v787_v48  ;;  %v1165_v49 = vpop.f32.mrf.mxu1 }
 0x311   : > { %v782_v50 = vpop.f32.mrf.mxu1 }
 0x312   : > { %v803_v50 = vld [vmem:[#allocation3 + $0x18] sm:$0xff] }
 0x313   : > { %v1166_v51 = vpop.f32.mrf.mxu1 }
 0x388   : > { %v516_v53 = vpop.xlane.xlu1 %515 }
 0x389   : > { %v517_v54 = vmax.f32 %v513_v52, %v516_v53 }
 0x38b   : > { %v518_v55 = vsub.f32 %v513_v52, %v517_v54  ;;  %599 = vst.msk [vmem:[#allocation2 + $0x8] sm:$0xff] %vm310_vm2, %v517_v54  ;;  %523 = vperm.xlu1 %1256, %v517_v54  }
 0x38d   : > { %v519_v23 = vmul.f32 1.442695, %v518_v55  ;;  %v398_v55 = vld [vmem:[#allocation4] sm:$0xff] }
 0x390   : > { %v654_v57 = vpop.xlane.xlu0 %653 }
 0x391   : > { %v1725_v58 = vmax.f32 %v1722_v56, %v654_v57 }
 0x393   : > { %v656_v59 = vsub.f32 %v1722_v56, %v1725_v58  ;;  %734 = vst.msk [vmem:[#allocation2 + $0x10] sm:$0xff] %vm310_vm2, %v1725_v58  ;;  %661 = vperm.xlu0 %1255, %v1725_v58  }
 0x395   : > { %v657_v35 = vmul.f32 1.442695, %v656_v59 }
 0x398   : > { %v789_v61 = vpop.xlane.xlu1 %788 }
 0x399   : > { %v790_v62 = vmax.f32 %v786_v60, %v789_v61 }
 0x39b   : > { %v791_v1 = vsub.f32 %v786_v60, %v790_v62  ;;  %869 = vst.msk [vmem:[#allocation2 + $0x18] sm:$0xff] %vm310_vm2, %v790_v62  ;;  %796 = vperm.xlu1 %1256, %v790_v62  }
 0x39d   : > { %v792_v26 = vmul.f32 1.442695, %v791_v1 }
 0x39f   : > { %549 = vrot.lane.b32.xlu1 %v1099_v63, %s1460_s18 }
 0x3a3   : > { %684 = vrot.lane.b32.xlu1 %v1099_v63, %s1461_s24 }
 0x3a7   : > { %819 = vrot.lane.b32.xlu1 %v1099_v63, %s1462_s5  ;;  %v538_v63 = vld [vmem:[#allocation4 + $0x8] sm:$0xff] }
 0x3cb   : > { %393 = vadd.xlane.f32.xlu1 %v392_v2 }
 0x406   : > { %v524_v3 = vpop.permute.xlu1 %523 }
 0x407   : > { %v526_v4 = vsub.f32 %v506_v37, %v524_v3 }
 0x409   : > { %v527_v5 = vmul.f32 1.442695, %v526_v4 }
 0x40b   : > { %1261 = vpow2.f32 %v527_v5 }
 0x40e   : > { %v662_v6 = vpop.permute.xlu0 %661 }
 0x40f   : > { %v664_v7 = vsub.f32 %v644_v42, %v662_v6  ;;  %v676_v6 = vld [vmem:[#allocation4 + $0x10] sm:$0xff] }
 0x411   : > { %v665_v8 = vmul.f32 1.442695, %v664_v7 }
 0x413   : > { %1263 = vpow2.f32 %v665_v8 }
 0x416   : > { %v797_v9 = vpop.permute.xlu1 %796 }
 0x417   : > { %v799_v10 = vsub.f32 %v779_v47, %v797_v9 }
 0x418   : > { %v1262_v11 = vpop.eup %1261 }
 0x419   : > { %v800_v12 = vmul.f32 1.442695, %v799_v10  ;;  %v532_v14 = vsel %vm319_vm0, %v1262_v11, 0.0  ;;  %v545_v19 = vpack.c.bf16 %v1262_v11, %v1262_v11 }
 0x41a   : > { %533 = vadd.xlane.f32.xlu0 %v532_v14  ;;  %v550_v17 = vpop.permute.xlu1 %549 }
 0x41b   : > { %1265 = vpow2.f32 %v800_v12  ;;  %v555_v18 = vsel %vm409_vm3, %v550_v17, 0 }
 0x41c   : > { %1144 = vmatpush3.bf16.msra.mxu0 %v555_v18  ;;  %1267 = vpow2.f32 %v519_v23 }
 0x41d   : > { %1155 = vmatprep.subr.bf16.mxu0 %v1456_v0  ;;  %1269 = vpow2.f32 %v792_v26 }
 0x41e   : > { %v685_v20 = vpop.permute.xlu1 %684  ;;  %1271 = vpow2.f32 %v380_v32 }
 0x41f   : > { %1146 = vmatmul.mubr.msk.bf16.vlgmr.msra.gmra.mxu0 %vm319_vm0, %v545_v19  ;;  %v690_v21 = vsel %vm409_vm3, %v685_v20, 0  ;;  %1273 = vpow2.f32 %v657_v35  ;;  %v811_v20 = vld [vmem:[#allocation4 + $0x18] sm:$0xff] }
 0x420   : > { %v1264_v22 = vpop.eup %1263  ;;  %1156 = vmatpush3.bf16.msra.mxu0 %v690_v21  ;;  %1157 = vmatprep.mubr.msk.bf16.mxu0 %vm1457_vm1, %v1456_v0 }
 0x421   : > { %v670_v24 = vsel %vm319_vm0, %v1264_v22, 0.0  ;;  %1167 = vmatprep.subr.bf16.mxu0 %v1456_v0  ;;  %v683_v27 = vpack.c.bf16 %v1264_v22, %v1264_v22 }
 0x422   : > { %671 = vadd.xlane.f32.xlu1 %v670_v24  ;;  %v820_v25 = vpop.permute.xlu1 %819 }
 0x423   : > { %v825_v28 = vsel %vm409_vm3, %v820_v25, 0 }
 0x427   : > { %1158 = vmatmul.mubr.msk.bf16.vlgmr.msra.gmra.mxu0 %vm319_vm0, %v683_v27 }
 0x428   : > { %v1266_v29 = vpop.eup %1265  ;;  %1168 = vmatpush3.bf16.msra.mxu0 %v825_v28  ;;  %1169 = vmatprep.mubr.msk.bf16.mxu0 %vm1457_vm1, %v1456_v0 }
 0x429   : > { %v805_v30 = vsel %vm319_vm0, %v1266_v29, 0.0  ;;  %v818_v31 = vpack.c.bf16 %v1266_v29, %v1266_v29  ;;  %v1268_v34 = vpop.eup %1267 }
 0x42a   : > { %806 = vadd.xlane.f32.xlu0 %v805_v30  ;;  %v1270_v36 = vpop.eup %1269  ;;  %v531_v42 = vmul.f32 %v1268_v34, %v530_v16 }
 0x42b   : > { %v1272_v37 = vpop.eup %1271  ;;  %v804_v51 = vmul.f32 %v1270_v36, %v803_v50 }
 0x42c   : > { %v1274_v0 = vpop.eup %1273  ;;  %v391_v39 = vmul.f32 %v1272_v37, %v390_v38 }
 0x42d   : > { %v669_v46 = vmul.f32 %v1274_v0, %v668_v45 }
 0x42f   : > { %1170 = vmatmul.mubr.msk.bf16.vlgmr.msra.gmra.mxu0 %vm319_vm0, %v818_v31 }
 0x433   : > { %541 = vperm.xlu1 %1256, %v1268_v34  }
 0x437   : > { %814 = vperm.xlu1 %1256, %v1270_v36  }
 0x440   : > { %401 = vperm.xlu0 %1255, %v1272_v37  }
 0x444   : > { %679 = vperm.xlu0 %1255, %v1274_v0  }
 0x454   : > { %v394_v40 = vpop.xlane.xlu1 %393 }
 0x455   : > { %v395_v41 = vadd.f32 %v394_v40, %v391_v39 }
 0x457   : > { %397 = vst.msk [vmem:[#allocation3] sm:$0xff] %vm310_vm2, %v395_v41 }
 0x45e   : > { %v873_v13 = vld [vmem:[#allocation3] sm:$0xff] }
 0x45f   : > { %1275 = vrcp.f32 %v873_v13 }
 0x46c   : > { %v1276_v15 = vpop.eup %1275 }
 0x46d   : > { %878 = vperm.xlu1 %1256, %v1276_v15  }
 0x4a3   : > { %v534_v43 = vpop.xlane.xlu0 %533 }
 0x4a4   : > { %v535_v44 = vadd.f32 %v534_v43, %v531_v42 }
 0x4a6   : > { %536 = vst.msk [vmem:[#allocation3 + $0x8] sm:$0xff] %vm310_vm2, %v535_v44 }
 0x4ab   : > { %v672_v47 = vpop.xlane.xlu1 %671 }
 0x4ac   : > { %v673_v48 = vadd.f32 %v672_v47, %v669_v46 }
 0x4ad   : > { %v883_v49 = vld [vmem:[#allocation3 + $0x8] sm:$0xff] }
 0x4ae   : > { %674 = vst.msk [vmem:[#allocation3 + $0x10] sm:$0xff] %vm310_vm2, %v673_v48  ;;  %1277 = vrcp.f32 %v883_v49 }
 0x4af   : > { %v542_v1 = vpop.permute.xlu1 %541 }
 0x4b0   : > { %v544_v2 = vmul.f32 %v542_v1, %v538_v63 }
 0x4b3   : > { %v807_v52 = vpop.xlane.xlu0 %806 }
 0x4b4   : > { %v808_v53 = vadd.f32 %v807_v52, %v804_v51 }
 0x4b5   : > { %v898_v54 = vld [vmem:[#allocation3 + $0x10] sm:$0xff] }
 0x4b6   : > { %809 = vst.msk [vmem:[#allocation3 + $0x18] sm:$0xff] %vm310_vm2, %v808_v53  ;;  %1279 = vrcp.f32 %v898_v54 }
 0x4bb   : > { %v1278_v56 = vpop.eup %1277  ;;  %v402_v57 = vpop.permute.xlu0 %401 }
 0x4bc   : > { %v404_v58 = vmul.f32 %v402_v57, %v398_v55  ;;  %888 = vperm.xlu0 %1255, %v1278_v56  }
 0x4bd   : > { %v913_v59 = vld [vmem:[#allocation3 + $0x18] sm:$0xff] }
 0x4be   : > { %v453_v60 = vadd.f32 %v1716_v33, %v404_v58  ;;  %1281 = vrcp.f32 %v913_v59  ;;  %v815_v33 = vpop.permute.xlu1 %814 }
 0x4bf   : > { %v680_v7 = vpop.permute.xlu0 %679  ;;  %v817_v23 = vmul.f32 %v815_v33, %v811_v20 }
 0x4c0   : > { %454 = vst.msk [vmem:[#allocation4] sm:$0xff] %vm319_vm0, %v453_v60  ;;  %v682_v10 = vmul.f32 %v680_v7, %v676_v6 }
 0x4c3   : > { %v1280_v61 = vpop.eup %1279 }
 0x4c4   : > { %903 = vperm.xlu0 %1255, %v1280_v61  }
 0x4c7   : > { %v875_v14 = vld [vmem:[#allocation4] sm:$0xff] }
 0x4cb   : > { %v1282_v62 = vpop.eup %1281 }
 0x4cc   : > { %918 = vperm.xlu0 %1255, %v1282_v62  }
 0x4df   : > { %v591_v3 = vpop.f32.mrf.mxu0 }
 0x4e0   : > { %v597_v4 = vadd.f32 %v591_v3, %v544_v2 }
 0x4e1   : > { %v1147_v5 = vpop.f32.mrf.mxu0 }
 0x4e2   : > { %598 = vst.msk [vmem:[#allocation4 + $0x8] sm:$0xff] %vm319_vm0, %v597_v4 }
 0x4e3   : > { %v594_v8 = vpop.f32.mrf.mxu0 }
 0x4e5   : > { %v1148_v9 = vpop.f32.mrf.mxu0 }
 0x4e7   : > { %v726_v11 = vpop.f32.mrf.mxu0 }
 0x4e8   : > { %v732_v12 = vadd.f32 %v726_v11, %v682_v10  ;;  %v879_v17 = vpop.permute.xlu1 %878 }
 0x4e9   : > { %v881_v18 = vmul.f32 %v879_v17, %v875_v14  ;;  %v1159_v19 = vpop.f32.mrf.mxu0  ;;  %v885_v29 = vld [vmem:[#allocation4 + $0x8] sm:$0xff] }
 0x4ea   : > { %733 = vst.msk [vmem:[#allocation4 + $0x10] sm:$0xff] %vm319_vm0, %v732_v12 }
 0x4eb   : > { %882 = vst.msk [vmem:[%s1767_s1] sm:$0xff] %vm319_vm0, %v881_v18  ;;  %v729_v21 = vpop.f32.mrf.mxu0 }
 0x4ed   : > { %v1160_v22 = vpop.f32.mrf.mxu0 }
 0x4ef   : > { %v861_v24 = vpop.f32.mrf.mxu0 }
 0x4f0   : > { %v867_v25 = vadd.f32 %v861_v24, %v817_v23 }
 0x4f1   : > { %v1171_v26 = vpop.f32.mrf.mxu0  ;;  %v900_v32 = vld [vmem:[#allocation4 + $0x10] sm:$0xff] }
 0x4f2   : > { %868 = vst.msk [vmem:[#allocation4 + $0x18] sm:$0xff] %vm319_vm0, %v867_v25 }
 0x4f3   : > { %v864_v27 = vpop.f32.mrf.mxu0 }
 0x4f5   : > { %v1172_v28 = vpop.f32.mrf.mxu0 }
 0x4f9   : > { %v915_v36 = vld [vmem:[#allocation4 + $0x18] sm:$0xff] }
 0x537   : > { %v889_v30 = vpop.permute.xlu0 %888 }
 0x538   : > { %v891_v31 = vmul.f32 %v889_v30, %v885_v29 }
 0x53a   : > { %893 = vrot.lane.b32.xlu1 %v891_v31, %s1463_s7 }
 0x53f   : > { %v904_v34 = vpop.permute.xlu0 %903 }
 0x540   : > { %v906_v35 = vmul.f32 %v904_v34, %v900_v32 }
 0x542   : > { %908 = vrot.lane.b32.xlu1 %v906_v35, %s1464_s19 }
 0x547   : > { %v919_v37 = vpop.permute.xlu0 %918 }
 0x548   : > { %v921_v0 = vmul.f32 %v919_v37, %v915_v36 }
 0x54a   : > { %923 = vrot.lane.b32.xlu1 %v921_v0, %s1465_s22 }
 0x5ac   : > { %v894_v38 = vpop.permute.xlu1 %893 }
 0x5ad   : > { %897 = vst.msk [vmem:[%s1767_s1] sm:$0xff] %vm896_vm4, %v894_v38 }
 0x5b4   : > { %v909_v39 = vpop.permute.xlu1 %908 }
 0x5b5   : > { %912 = vst.msk [vmem:[%s1767_s1] sm:$0xff] %vm911_vm5, %v909_v39 }
 0x5bc   : > { %v924_v40 = vpop.permute.xlu1 %923 }
 0x5bd   : > { %927 = vst.msk [vmem:[%s1767_s1] sm:$0xff] %vm926_vm6, %v924_v40 }
 0x5be   : > { %1380 = shalt.err (!%p1377_p12)
}
 0x5bf   : > { %s1381_s11 = scalar_lea.hbm %s1779_s21, 128  ;;  %s1385_s24 = scalar_lea.hbm %s1825_s3, 256 }
 0x5c0   : > { %p1382_p1 = scmp.ne.s32.totalorder %s1779_s21, %s1381_s11  ;;  %p1386_p6 = scmp.lt.s32.totalorder %s1779_s21, %s1825_s3 }
 0x5c1   : > { %p1387_p7 = scmp.lt.s32.totalorder %s1385_s24, %s1381_s11 }
 0x5c2   : > { %p1383_p2 = pnand %p1382_p1, %p1542_p9 }
 0x5c3   : > { %p1388_p8 = por %p1387_p7, %p1386_p6 }
 0x5c4   : > { %p1384_p5 = pneg %p1383_p2 }
 0x5c6   : > { %p1389_p0 = pnand %p1388_p8, %p1384_p5 }
 0x5c8   : > { %1392 = shalt.err (!%p1389_p0)
}
 0x5c9   : > { %1179 = dma.vmem_to_hbm [thread:$0]  (%p1542_p9), %s945_s23, 128, %s1779_s21, %s929_s4  }
 0x5ca PF: > { %s956_s6 = sand.u32 1, %s1431_s12   ;;  %p1840_p3 = scmp.ge.s32.totalorder %s1451_s17, 2 }
 0x5cb   : > { %s957_s1 = scalar_lea.sflag [#allocation7], %s956_s6 }
 0x5cc   : > { %p1192_p4 = pnand %p1840_p3, %p1549_p11 }
 0x5ce   : > { %p1193_p10 = pneg %p1192_p4 }
 0x5d0   : > { %1426 = dma.done.wait (%p1193_p10), %s957_s1, 128  }
 0x5d1   : > { %1428 = vsyncadd (%p1193_p10), %s957_s1, 4294967168  ;;  %s22_s17 = sadd.s32 1, %s1451_s17   ;;  %s1841_s15 = sld [smem:[#allocation15_spill]] }
 0x5d2   : > { %p19_p13 = scmp.ge.s32.totalorder %s22_s17, 4   ;;  %s1842_s16 = sld [smem:[#allocation16_spill]] }
 0x5d3   : > { %s1843_s12 = smov %s1435_s13  ;;  %s1844_s13 = smov %s1439_s14 }
 0x5d4   : > { %s1845_s14 = smov %s1547_s26  ;;  %21 = sbr.rel (!%p19_p13) target bundleno = 10 (0xa), region = 118 }
 0x5d9   :  { %962 = vsyncpa [#allocation6], 1 }
 0x5da   :  { %964 = vsyncpa [#allocation6 + $0x1], 1 }
 0x5db   :  { %965 = vsyncpa [#allocation9], 1 }
 0x5dc   :  { %967 = vsyncpa [#allocation9 + $0x1], 1 }
 0x5dd   :  { %968 = vsyncpa [#allocation7], 1 }
 0x5de   :  { %970 = vsyncpa [#allocation7 + $0x1], 1 }

</bundles_post_ra>
